<compile_context>
chip_gen: v5e
topology: v5e:2x2
jax: 0.10.0
libtpu: 0.0.40
codegen_flags: <defaults>
</compile_context>

<pallas_src>
import jax
import jax.numpy as jnp
from jax.experimental import pallas as pl
from jax.experimental.pallas import tpu as pltpu

EPS = 1e-4


def _make_stats_kernel(total_count):
    cnt = float(total_count)

    def _stats_kernel(x_ref, g_ref, b_ref, scale_ref, shift_ref, sum_sc, ssq_sc):
        n = pl.program_id(0)
        l = pl.program_id(1)

        @pl.when(jnp.logical_and(n == 0, l == 0))
        def _():
            sum_sc[...] = jnp.zeros_like(sum_sc)
            ssq_sc[...] = jnp.zeros_like(ssq_sc)

        x = x_ref[...].astype(jnp.float32)                      # (C, TL)
        sum_sc[...] += jnp.sum(x, axis=-1, keepdims=True)       # (C, 1)
        ssq_sc[...] += jnp.sum(x * x, axis=-1, keepdims=True)   # (C, 1)

        is_last = jnp.logical_and(n == pl.num_programs(0) - 1,
                                  l == pl.num_programs(1) - 1)

        @pl.when(is_last)
        def _():
            inv_cnt = jnp.float32(1.0 / cnt)
            mean = sum_sc[...] * inv_cnt
            var = jnp.maximum(ssq_sc[...] * inv_cnt - mean * mean, 0.0)
            inv_std = jax.lax.rsqrt(var + jnp.float32(EPS))     # EUP op, ~free
            scale = g_ref[...] * inv_std                        # (C, 1)
            scale_ref[...] = scale
            shift_ref[...] = b_ref[...] - mean * scale

    return _stats_kernel


def _norm_kernel(x_ref, scale_ref, shift_ref, o_ref):
    # x_ref/o_ref: (C, TL); scale/shift: (C, 1) -> broadcast along lanes once.
    x = x_ref[...].astype(jnp.float32)
    o_ref[...] = (x * scale_ref[...] + shift_ref[...]).astype(o_ref.dtype)


def _choose_lane_tile(L, C, max_tile_bytes=2 << 20):
    for tl in (2048, 1024, 512, 256, 128):
        if L % tl == 0 and C * tl * 4 <= max_tile_bytes:
            return tl
    return L  # fall back to full extent (exempt from the (8,128) rule)


def switch_batch_norm_2d(x_nchw, gamma, beta):
    """Training-mode BatchNorm2d forward. x_nchw: (N, C, H, W); gamma/beta: (C,)."""
    N, C, H, W = x_nchw.shape
    L = H * W
    TL = _choose_lane_tile(L, C)
    n_lane_tiles = L // TL

    x3 = x_nchw.reshape(N, C, L)                 # free view, no data movement
    g = gamma.reshape(C, 1).astype(jnp.float32)
    b = beta.reshape(C, 1).astype(jnp.float32)

    tile_bytes = C * TL * 4
    vmem_limit = max(4 << 20, min(48 << 20, 8 * tile_bytes + (2 << 20)))

    elems = N * C * L
    stats_cost = pl.CostEstimate(
        flops=3 * elems + 10 * C,
        transcendentals=C,
        bytes_accessed=elems * 4 + 3 * C * 4,
    )
    norm_cost = pl.CostEstimate(
        flops=2 * elems,
        transcendentals=0,
        bytes_accessed=2 * elems * 4 + 2 * C * 4,
    )

    x_spec = pl.BlockSpec((None, C, TL), lambda n, l: (n, 0, l))
    cvec_spec = pl.BlockSpec((C, 1), lambda n, l: (0, 0))

    # ---- Phase 1: per-channel stats -> (scale, shift) -----------------------
    scale, shift = pl.pallas_call(
        _make_stats_kernel(N * L),
        out_shape=(jax.ShapeDtypeStruct((C, 1), jnp.float32),
                   jax.ShapeDtypeStruct((C, 1), jnp.float32)),
        grid_spec=pltpu.PrefetchScalarGridSpec(
            num_scalar_prefetch=0,
            grid=(N, n_lane_tiles),
            in_specs=[x_spec, cvec_spec, cvec_spec],
            out_specs=[cvec_spec, cvec_spec],
            scratch_shapes=[pltpu.VMEM((C, 1), jnp.float32),
                            pltpu.VMEM((C, 1), jnp.float32)],
        ),
        compiler_params=pltpu.CompilerParams(
            dimension_semantics=("arbitrary", "arbitrary"),
            vmem_limit_bytes=vmem_limit,
        ),
        cost_estimate=stats_cost,
    )(x3, g, b)

    # ---- Phase 2: normalize + affine (fully parallel, lane-dense stores) ----
    out3 = pl.pallas_call(
        _norm_kernel,
        out_shape=jax.ShapeDtypeStruct((N, C, L), x_nchw.dtype),
        grid_spec=pltpu.PrefetchScalarGridSpec(
            num_scalar_prefetch=0,
            grid=(N, n_lane_tiles),
            in_specs=[x_spec, cvec_spec, cvec_spec],
            out_specs=pl.BlockSpec((None, C, TL), lambda n, l: (n, 0, l)),
        ),
        compiler_params=pltpu.CompilerParams(
            dimension_semantics=("parallel", "parallel"),
            vmem_limit_bytes=vmem_limit,
        ),
        cost_estimate=norm_cost,
    )(x3, scale, shift)

    return out3.reshape(N, C, H, W)


def _reference(x_nchw, gamma, beta):
    mean = jnp.mean(x_nchw, axis=(0, 2, 3), keepdims=True)
    var = jnp.mean(jnp.square(x_nchw - mean), axis=(0, 2, 3), keepdims=True)
    xhat = (x_nchw - mean) * jax.lax.rsqrt(var + EPS)
    return xhat * gamma.reshape(1, -1, 1, 1) + beta.reshape(1, -1, 1, 1)


if __name__ == "__main__":
    key = jax.random.PRNGKey(0)
    kx, kg, kb = jax.random.split(key, 3)

    N, C, H, W = 2, 4, 16, 16   # num_features = C = 4
    x = jax.random.normal(kx, (N, C, H, W), dtype=jnp.float32)
    gamma = 1.0 + 0.1 * jax.random.normal(kg, (C,), dtype=jnp.float32)
    beta = 0.1 * jax.random.normal(kb, (C,), dtype=jnp.float32)

    out = switch_batch_norm_2d(x, gamma, beta)
    out = jax.block_until_ready(out)

    ref = _reference(x, gamma, beta)
    assert out.shape == (N, C, H, W)
    assert jnp.allclose(out, ref, atol=1e-3, rtol=1e-3), "mismatch vs reference"

    print("KERNEL_OK")
</pallas_src>

<mosaic_0001>
module attributes {stable_mosaic.version = 11 : i64} {
  func.func @_stats_kernel(%arg0: i32, %arg1: i32, %arg2: memref<1x4x256xf32, #tpu.memory_space<vmem>>, %arg3: memref<4x1xf32, #tpu.memory_space<vmem>>, %arg4: memref<4x1xf32, #tpu.memory_space<vmem>>, %arg5: memref<4x1xf32, #tpu.memory_space<vmem>>, %arg6: memref<4x1xf32, #tpu.memory_space<vmem>>, %arg7: memref<4x1xf32, #tpu.memory_space<vmem>>, %arg8: memref<4x1xf32, #tpu.memory_space<vmem>>) attributes {dimension_semantics = [#tpu.dimension_semantics<arbitrary>, #tpu.dimension_semantics<arbitrary>], iteration_bounds = array<i64: 2, 1>, scalar_prefetch = 0 : i64, scratch_operands = 2 : i64, tpu.core_type = #tpu.core_type<tc>, window_params = [{transform_indices = @transform_0, window_bounds = array<i64: 1, 4, 256>}, {pipeline_mode = #tpu.pipeline_mode<synchronous>, transform_indices = @transform_1, window_bounds = array<i64: 4, 1>}, {pipeline_mode = #tpu.pipeline_mode<synchronous>, transform_indices = @transform_2, window_bounds = array<i64: 4, 1>}, {pipeline_mode = #tpu.pipeline_mode<synchronous>, transform_indices = @transform_3, window_bounds = array<i64: 4, 1>}, {pipeline_mode = #tpu.pipeline_mode<synchronous>, transform_indices = @transform_4, window_bounds = array<i64: 4, 1>}]} {
    %c0_i32 = arith.constant 0 : i32
    %0 = arith.cmpi eq, %arg0, %c0_i32 : i32
    %c0_i32_0 = arith.constant 0 : i32
    %1 = arith.cmpi eq, %arg1, %c0_i32_0 : i32
    %2 = arith.andi %0, %1 : i1
    %3 = arith.extui %2 : i1 to i32
    %c0_i32_1 = arith.constant 0 : i32
    %4 = arith.cmpi ne, %3, %c0_i32_1 : i32
    scf.if %4 {
      %cst_15 = arith.constant 0.000000e+00 : f32
      %23 = vector.broadcast %cst_15 : f32 to vector<4x1xf32>
      %c0_16 = arith.constant 0 : index
      %c0_17 = arith.constant 0 : index
      %24 = vector.load %arg7[%c0_16, %c0_17] : memref<4x1xf32, #tpu.memory_space<vmem>>, vector<4x1xf32>
      tpu.vector_store %arg7[%c0_16, %c0_17], %23 {strides = array<i32>} : memref<4x1xf32, #tpu.memory_space<vmem>>, vector<4x1xf32>,
      %cst_18 = arith.constant 0.000000e+00 : f32
      %25 = vector.broadcast %cst_18 : f32 to vector<4x1xf32>
      %c0_19 = arith.constant 0 : index
      %c0_20 = arith.constant 0 : index
      %26 = vector.load %arg8[%c0_19, %c0_20] : memref<4x1xf32, #tpu.memory_space<vmem>>, vector<4x1xf32>
      tpu.vector_store %arg8[%c0_19, %c0_20], %25 {strides = array<i32>} : memref<4x1xf32, #tpu.memory_space<vmem>>, vector<4x1xf32>,
    } else {
    }
    %c0 = arith.constant 0 : index
    %c0_2 = arith.constant 0 : index
    %c0_3 = arith.constant 0 : index
    %5 = vector.load %arg2[%c0, %c0_2, %c0_3] : memref<1x4x256xf32, #tpu.memory_space<vmem>>, vector<1x4x256xf32>
    %6 = vector.shape_cast %5 : vector<1x4x256xf32> to vector<4x256xf32>
    %c0_4 = arith.constant 0 : index
    %c0_5 = arith.constant 0 : index
    %7 = vector.load %arg7[%c0_4, %c0_5] : memref<4x1xf32, #tpu.memory_space<vmem>>, vector<4x1xf32>
    %cst = arith.constant dense<0.000000e+00> : vector<4xf32>
    %8 = vector.multi_reduction <add>, %6, %cst [1] : vector<4x256xf32> to vector<4xf32>
    %9 = vector.shape_cast %8 : vector<4xf32> to vector<4x1xf32>
    %10 = arith.addf %7, %9 : vector<4x1xf32>
    %c0_6 = arith.constant 0 : index
    %c0_7 = arith.constant 0 : index
    %11 = vector.load %arg7[%c0_6, %c0_7] : memref<4x1xf32, #tpu.memory_space<vmem>>, vector<4x1xf32>
    tpu.vector_store %arg7[%c0_6, %c0_7], %10 {strides = array<i32>} : memref<4x1xf32, #tpu.memory_space<vmem>>, vector<4x1xf32>,
    %c0_8 = arith.constant 0 : index
    %c0_9 = arith.constant 0 : index
    %12 = vector.load %arg8[%c0_8, %c0_9] : memref<4x1xf32, #tpu.memory_space<vmem>>, vector<4x1xf32>
    %13 = arith.mulf %6, %6 : vector<4x256xf32>
    %cst_10 = arith.constant dense<0.000000e+00> : vector<4xf32>
    %14 = vector.multi_reduction <add>, %13, %cst_10 [1] : vector<4x256xf32> to vector<4xf32>
    %15 = vector.shape_cast %14 : vector<4xf32> to vector<4x1xf32>
    %16 = arith.addf %12, %15 : vector<4x1xf32>
    %c0_11 = arith.constant 0 : index
    %c0_12 = arith.constant 0 : index
    %17 = vector.load %arg8[%c0_11, %c0_12] : memref<4x1xf32, #tpu.memory_space<vmem>>, vector<4x1xf32>
    tpu.vector_store %arg8[%c0_11, %c0_12], %16 {strides = array<i32>} : memref<4x1xf32, #tpu.memory_space<vmem>>, vector<4x1xf32>,
    %c1_i32 = arith.constant 1 : i32
    %18 = arith.cmpi eq, %arg0, %c1_i32 : i32
    %c0_i32_13 = arith.constant 0 : i32
    %19 = arith.cmpi eq, %arg1, %c0_i32_13 : i32
    %20 = arith.andi %18, %19 : i1
    %21 = arith.extui %20 : i1 to i32
    %c0_i32_14 = arith.constant 0 : i32
    %22 = arith.cmpi ne, %21, %c0_i32_14 : i32
    scf.if %22 {
      %c0_15 = arith.constant 0 : index
      %c0_16 = arith.constant 0 : index
      %23 = vector.load %arg7[%c0_15, %c0_16] : memref<4x1xf32, #tpu.memory_space<vmem>>, vector<4x1xf32>
      %cst_17 = arith.constant 0.001953125 : f32
      %24 = vector.broadcast %cst_17 : f32 to vector<4x1xf32>
      %25 = arith.mulf %23, %24 : vector<4x1xf32>
      %c0_18 = arith.constant 0 : index
      %c0_19 = arith.constant 0 : index
      %26 = vector.load %arg8[%c0_18, %c0_19] : memref<4x1xf32, #tpu.memory_space<vmem>>, vector<4x1xf32>
      %cst_20 = arith.constant 0.001953125 : f32
      %27 = vector.broadcast %cst_20 : f32 to vector<4x1xf32>
      %28 = arith.mulf %26, %27 : vector<4x1xf32>
      %29 = arith.mulf %25, %25 : vector<4x1xf32>
      %30 = arith.subf %28, %29 : vector<4x1xf32>
      %cst_21 = arith.constant 0.000000e+00 : f32
      %31 = vector.broadcast %cst_21 : f32 to vector<4x1xf32>
      %32 = arith.maximumf %30, %31 : vector<4x1xf32>
      %cst_22 = arith.constant 9.99999974E-5 : f32
      %33 = vector.broadcast %cst_22 : f32 to vector<4x1xf32>
      %34 = arith.addf %32, %33 : vector<4x1xf32>
      %35 = math.rsqrt %34 : vector<4x1xf32>
      %c0_23 = arith.constant 0 : index
      %c0_24 = arith.constant 0 : index
      %36 = vector.load %arg3[%c0_23, %c0_24] : memref<4x1xf32, #tpu.memory_space<vmem>>, vector<4x1xf32>
      %37 = arith.mulf %36, %35 : vector<4x1xf32>
      %c0_25 = arith.constant 0 : index
      %c0_26 = arith.constant 0 : index
      %38 = vector.load %arg5[%c0_25, %c0_26] : memref<4x1xf32, #tpu.memory_space<vmem>>, vector<4x1xf32>
      tpu.vector_store %arg5[%c0_25, %c0_26], %37 {strides = array<i32>} : memref<4x1xf32, #tpu.memory_space<vmem>>, vector<4x1xf32>,
      %c0_27 = arith.constant 0 : index
      %c0_28 = arith.constant 0 : index
      %39 = vector.load %arg4[%c0_27, %c0_28] : memref<4x1xf32, #tpu.memory_space<vmem>>, vector<4x1xf32>
      %40 = arith.mulf %25, %37 : vector<4x1xf32>
      %41 = arith.subf %39, %40 : vector<4x1xf32>
      %c0_29 = arith.constant 0 : index
      %c0_30 = arith.constant 0 : index
      %42 = vector.load %arg6[%c0_29, %c0_30] : memref<4x1xf32, #tpu.memory_space<vmem>>, vector<4x1xf32>
      tpu.vector_store %arg6[%c0_29, %c0_30], %41 {strides = array<i32>} : memref<4x1xf32, #tpu.memory_space<vmem>>, vector<4x1xf32>,
    } else {
    }
    return
  }
  func.func @transform_0(%arg0: i32, %arg1: i32) -> (i32, i32, i32) {
    %c0_i32 = arith.constant 0 : i32
    %c0_i32_0 = arith.constant 0 : i32
    return %arg0, %c0_i32, %arg1 : i32, i32, i32
  }
  func.func @transform_1(%arg0: i32, %arg1: i32) -> (i32, i32) {
    %c0_i32 = arith.constant 0 : i32
    %c0_i32_0 = arith.constant 0 : i32
    %c0_i32_1 = arith.constant 0 : i32
    return %c0_i32, %c0_i32_0 : i32, i32
  }
  func.func @transform_2(%arg0: i32, %arg1: i32) -> (i32, i32) {
    %c0_i32 = arith.constant 0 : i32
    %c0_i32_0 = arith.constant 0 : i32
    %c0_i32_1 = arith.constant 0 : i32
    return %c0_i32, %c0_i32_0 : i32, i32
  }
  func.func @transform_3(%arg0: i32, %arg1: i32) -> (i32, i32) {
    %c0_i32 = arith.constant 0 : i32
    %c0_i32_0 = arith.constant 0 : i32
    %c0_i32_1 = arith.constant 0 : i32
    return %c0_i32, %c0_i32_0 : i32, i32
  }
  func.func @transform_4(%arg0: i32, %arg1: i32) -> (i32, i32) {
    %c0_i32 = arith.constant 0 : i32
    %c0_i32_0 = arith.constant 0 : i32
    %c0_i32_1 = arith.constant 0 : i32
    return %c0_i32, %c0_i32_0 : i32, i32
  }
}

</mosaic_0001>

<bundles_post_ra>
// kernel: tpu_custom_call.1
= control target key start
LH: loop header
LB: loop body
LE: loop exit
PB: predicated region body
PF: predicated region fallthrough
CT: control target
= control target key end

     0   :  { %10 = vsyncpa [#allocation5], 0  ;;  %s630_s0 = inlined_call_operand.hbm [shape: f32[2,4,256], index: 0, kind: input, shape index: {}]   ;;  %s631_s1 = inlined_call_operand.vmem [shape: f32[4,1], index: 1, kind: input, shape index: {}]   ;;  %s632_s2 = inlined_call_operand.vmem [shape: f32[4,1], index: 2, kind: input, shape index: {}]   ;;  %s633_s3 = inlined_call_operand.vmem [shape: f32[4,1], index: 3, kind: output, shape index: {0}]   ;;  %s634_s4 = inlined_call_operand.vmem [shape: f32[4,1], index: 4, kind: output, shape index: {1}]  }
   0x1   :  { %12 = vsyncpa [#allocation5 + $0x1], 0  ;;  %s527_s15 = smov 0   ;;  %s529_s16 = smov 0  }
   0x2   :  { %s531_s17 = smov 0   ;;  %s533_s18 = smov 0  }
   0x3   :  { %s535_s19 = smov 0   ;;  %s537_s20 = smov 0  }
   0x4 LB: > { %s346_s21 = sadd.s32 4294967295, %s499_s20   ;;  %s30_s22 = sadd.s32 1, %s495_s19  ;;  %s499_s20 = sphi %s537_s20, %s18_s20   ;;  %s495_s19 = sphi %s535_s19, %s641_s19   ;;  %s491_s18 = sphi %s533_s18, %s640_s18   ;;  %s487_s17 = sphi %s531_s17, %s639_s17   ;;  %s483_s16 = sphi %s529_s16, %s638_s16   ;;  %s479_s15 = sphi %s527_s15, %s637_s15  }
   0x5   : > { %p32_p0 = scmp.ge.s32.totalorder %s30_s22, 2  ;;  %s39_s23 = sadd.s32 1, %s487_s17 }
   0x6   : > { %p46_p1 = scmp.ne.s32.totalorder %s487_s17, %s483_s16  ;;  %p47_p2 = scmp.eq.s32.totalorder %s499_s20, 0 }
   0x7   : > { %s643_s22 = smov (%p32_p0, %s30_s22), 0  ;;  %p52_p4 = scmp.ne.s32.totalorder %s483_s16, %s479_s15 }
   0x8   : > { %p563_p3 = por %p47_p2, %p46_p1  ;;  %s34_s25 = ssub.s32 %s495_s19, %s643_s22 }
   0x9   : > { %p53_p5 = scmp.eq.s32.totalorder %s346_s21, 0  ;;  %p37_p6 = scmp.eq.s32.totalorder %s34_s25, 0 }
   0xa   : > { %p367_p8 = scmp.lt.s32.totalorder %s499_s20, 2  ;;  %s166_s28 = sand.u32 1, %s487_s17  }
   0xb   : > { %p570_p7 = por %p53_p5, %p52_p4  ;;  %s358_s29 = sshll.u32 %s495_s19, 3 }
   0xc   : > { %s576_s27 = scalar_select %p37_p6, %s487_s17, %s39_s23  }
   0xd   : > { %s349_s30 = sshll.u32 %s166_s28, 3  ;;  %s177_s7 = scalar_lea.hbm %s630_s0, %s358_s29 }
   0xe   : > { %s179_s8 = sshll.u32 %s177_s7, 4  ;;  %s170_s9 = scalar_lea.vmem [#allocation4], %s349_s30  ;;  %s180_s8 = int_to_ptr.hbm [resolvable:$true] %s179_s8 }
   0xf   : > { %s181_s10 = sshll.u32 %s170_s9, 4  ;;  %p364_p9 = pnand %p367_p8, %p563_p3  ;;  %s182_s10 = int_to_ptr.vmem [resolvable:$true] %s181_s10 }
  0x10   : > { %p352_p10 = scmp.ge.s32.totalorder %s499_s20, 1  ;;  %p186_p11 = scmp.lt.s32.totalorder %s499_s20, 3 }
  0x11   : > { %s167_s11 = scalar_lea.sflag [#allocation5], %s166_s28 }
  0x12   : > { %366 = dma.hbm_to_vmem [thread:$0]  (!%p364_p9), %s180_s8, 128, %s182_s10, %s167_s11  }
  0x13   : > { %p187_p12 = pnand %p352_p10, %p186_p11 }
  0x14   : > { %s192_s12 = sand.u32 (!%p187_p12), 1, %s483_s16  }
  0x15   : > { %190 = sbr.rel (%p187_p12) target bundleno = 213 (0xd5), region = 32  ;;  %s353_s13 = sshll.u32 (!%p187_p12), %s192_s12, 3 }
  0x16   : > { %s193_s14 = scalar_lea.sflag (!%p187_p12), [#allocation5], %s192_s12  ;;  %s196_s15 = scalar_lea.vmem (!%p187_p12), [#allocation4], %s353_s13 }
  0x1a   : > { %474 = dma.done.wait (%p570_p7), %s193_s14, 128  }
  0x1b   : > { %476 = vsyncadd (%p570_p7), %s193_s14, 4294967168  ;;  %p218_p13 = scmp.eq.s32.totalorder %s491_s18, 0 }
  0x1c   : > { %vm224_vm0 = vcmask (%p218_p13), 3072   ;;  %v501_v0 = vmov (%p218_p13), 0.0  }
  0x1d   : > { %223 = sbr.rel (!%p218_p13) target bundleno = 34 (0x22), region = 40  ;;  %225 = vst.msk [vmem:[#allocation2] sm:$0xf] (%p218_p13), %vm224_vm0, %v501_v0 }
  0x1e   : > { %226 = vst.msk [vmem:[#allocation3] sm:$0xf] (%p218_p13), %vm224_vm0, %v501_v0 }
  0x22 PF: > { %v227_v1 = vld [vmem:[%s196_s15] sm:$0xff]  ;;  %vm235_vm1 = vcmask 1043456   ;;  %p259_p0 = scmp.eq.s32.totalorder %s491_s18, 1  ;;  %vm242_vm2 = vcmask 3072  }
  0x23   : > { %230 = vst [vmem:[#allocation1] ss:$2 sm:$0xff] %v227_v1  ;;  %v245_v2 = vmul.f32 %v227_v1, %v227_v1  ;;  %v282_v33 = vld [vmem:[%s631_s1] sm:$0xf] (%p259_p0) }
  0x24   : > { %v228_v13 = vld [vmem:[#allocation2] sm:$0xf]  ;;  %v285_v36 = vld [vmem:[%s632_s2] sm:$0xf] (%p259_p0) }
  0x25   : > { %v244_v16 = vld [vmem:[#allocation3] sm:$0xf] }
  0x2a   : > { %v231_v3 = vld.sshfl [vmem:[#allocation1] sm:$0xff pattern:$0x75316420]  ;;  %v232_v4 = vld.sshfl [vmem:[#allocation1 + $0x8] sm:$0xff pattern:$0x75316420] }
  0x2b   : > { %v236_v5 = vsel %vm235_vm1, %v231_v3, 0.0  ;;  %v237_v6 = vsel %vm235_vm1, %v232_v4, 0.0  ;;  %247 = vst [vmem:[#allocation1] ss:$2 sm:$0xff] %v245_v2 }
  0x2c   : > { %v238_v7 = vadd.f32 %v237_v6, %v236_v5 }
  0x2e   : > { %239 = vadd.xlane.f32.xlu0 %v238_v7 }
  0x32   : > { %v248_v8 = vld.sshfl [vmem:[#allocation1] sm:$0xff pattern:$0x75316420]  ;;  %v249_v9 = vld.sshfl [vmem:[#allocation1 + $0x8] sm:$0xff pattern:$0x75316420] }
  0x33   : > { %v252_v10 = vsel %vm235_vm1, %v248_v8, 0.0  ;;  %v253_v11 = vsel %vm235_vm1, %v249_v9, 0.0 }
  0x34   : > { %v254_v12 = vadd.f32 %v253_v11, %v252_v10 }
  0x36   : > { %255 = vadd.xlane.f32.xlu0 %v254_v12 }
  0xa1   : > { %v240_v14 = vpop.xlane.xlu0 %239 }
  0xa2   : > { %v241_v15 = vadd.f32 %v240_v14, %v228_v13 }
  0xa4   : > { %243 = vst.msk [vmem:[#allocation2] sm:$0xf] %vm242_vm2, %v241_v15 }
  0xa8   : > { %263 = sbr.rel (!%p259_p0) target bundleno = 213 (0xd5), region = 44 }
  0xa9   : > { %v256_v17 = vpop.xlane.xlu0 %255 }
  0xaa   : > { %v257_v18 = vadd.f32 %v256_v17, %v244_v16 }
  0xab   : > { %v264_v19 = vld [vmem:[#allocation2] sm:$0xf] (%p259_p0) }
  0xac   : > { %258 = vst.msk [vmem:[#allocation3] sm:$0xf] %vm242_vm2, %v257_v18  ;;  %v265_v21 = vmul.f32 (%p259_p0), 0.001953125, %v264_v19 }
  0xae   : > { %v268_v23 = vmul.f32 %v265_v21, %v265_v21 }
  0xb3   : > { %v266_v20 = vld [vmem:[#allocation3] sm:$0xf] }
  0xb4   : > { %v267_v22 = vmul.f32 0.001953125, %v266_v20 }
  0xb6   : > { %v269_v24 = vsub.f32 %v267_v22, %v268_v23 }
  0xb8   : > { %v270_v25 = vmax.f32 %v269_v24, 0.0 }
  0xba   : > { %v271_v26 = vadd.f32 0.0001, %v270_v25 }
  0xbc   : > { %417 = vrsqrt.f32 %v271_v26  ;;  %vm278_vm3 = vweird.f32 %v271_v26 }
  0xc2   : > { %v418_v27 = vpop.eup %417 }
  0xc3   : > { %v273_v28 = vmul.f32 %v418_v27, %v271_v26  ;;  %vm279_vm4 = vweird.f32 %v418_v27 }
  0xc4   : > { %vm280_vm5 = vmor %vm278_vm3, %vm279_vm4 }
  0xc5   : > { %v274_v29 = vmul.f32 %v418_v27, %v273_v28 }
  0xc7   : > { %v275_v30 = vmul.f32 0.5, %v274_v29 }
  0xc9   : > { %v276_v31 = vsub.f32 1.5, %v275_v30 }
  0xcb   : > { %v277_v32 = vmul.f32 %v418_v27, %v276_v31 }
  0xcd   : > { %v281_v34 = vsel %vm280_vm5, %v418_v27, %v277_v32 }
  0xce   : > { %v283_v35 = vmul.f32 %v282_v33, %v281_v34 }
  0xd0   : > { %284 = vst.msk [vmem:[%s633_s3] sm:$0xf] %vm242_vm2, %v283_v35  ;;  %v286_v37 = vmul.f32 %v283_v35, %v265_v21 }
  0xd2   : > { %v287_v38 = vsub.f32 %v285_v36, %v286_v37 }
  0xd4   : > { %288 = vst.msk [vmem:[%s634_s4] sm:$0xf] %vm242_vm2, %v287_v38 }
  0xd5 PF: > { %s18_s20 = sadd.s32 1, %s499_s20   ;;  %s637_s15 = smov %s483_s16 }
  0xd6   : > { %p15_p1 = scmp.ge.s32.totalorder %s18_s20, 4   ;;  %s638_s16 = smov %s487_s17 }
  0xd7   : > { %s639_s17 = smov %s576_s27  ;;  %s640_s18 = smov %s495_s19 }
  0xd8   : > { %s641_s19 = smov %s643_s22  ;;  %17 = sbr.rel (!%p15_p1) target bundleno = 4 (0x4), region = 84 }
  0xdd   :  { %306 = vsyncpa [#allocation5], 1 }
  0xde   :  { %308 = vsyncpa [#allocation5 + $0x1], 1 }

</bundles_post_ra>
